<compile_context>
chip_gen: v7x
topology: tpu7x:2x2x1
jax: 0.10.0
libtpu: 0.0.40
codegen_flags: <defaults>
</compile_context>

<pallas_src>
import functools

import jax
import jax.numpy as jnp
from jax import lax
from jax.experimental import pallas as pl
from jax.experimental.pallas import tpu as pltpu


def _l2softmax_kernel(x_ref, w_ref, rscale_ref, wscale_ref, o_ref, *, precision):
    # Raw logits on the MXU, contracting the feature dim of BOTH operands
    # (no transpose of the weight tile), accumulating in f32.
    logits = lax.dot_general(
        x_ref[...], w_ref[...],
        dimension_numbers=(((1,), (1,)), ((), ())),
        preferred_element_type=jnp.float32,
        precision=precision,
    )                                                    # (tb, tc) f32
    # row scale = 1/max(||x_row||, eps); col scale = (1/temp)/max(||w_c||, eps).
    o_ref[...] = (logits * rscale_ref[...] * wscale_ref[...]).astype(o_ref.dtype)


def _round_down(a, m):
    return (a // m) * m


def l2softmax(x, W, temp=0.05, tb=512, tc=256):
    """x: (B, num_features), W: (num_classes, num_features) -> (B, num_classes)."""
    B, F = x.shape
    C, Fw = W.shape
    assert F == Fw

    x_isz = jnp.dtype(x.dtype).itemsize
    w_isz = jnp.dtype(W.dtype).itemsize
    o_isz = x_isz

    # ---- class tile: lane-dense (multiple of 128) output stores when C allows ----
    if C < 128:
        tc = C                                   # full-dim block (valid layout)
    else:
        tc = max(128, _round_down(min(tc, C), 128))

    # ---- batch tile: multiple of 8, shrunk so double-buffered tiles fit VMEM ----
    if B < 8:
        tb = B                                   # full-dim block
    else:
        tb = max(8, _round_down(min(tb, B), 8))
        budget = 48 * 1024 * 1024                # fits v7x's 64 MiB VMEM with headroom
        while tb > 8:
            need = 2 * tb * F * x_isz + 2 * tc * F * w_isz + 2 * tb * tc * o_isz
            if need <= budget:
                break
            tb = max(8, _round_down(tb // 2, 8))
    # TODO(synk): for very large F where even (8,F)/(tc,F) tiles blow the VMEM budget,
    # add a third grid axis over F with an f32 (tb,tc) accumulator scratch (K-tiling).

    nb = pl.cdiv(B, tb)
    nc = pl.cdiv(C, tc)
    # v7x has 2 TensorCores: ensure a 'parallel' axis has >= 2 blocks when possible.
    if nb == 1 and nc == 1 and C > 128:
        tc = 128
        nc = pl.cdiv(C, tc)

    # ---- per-row / per-class scales, precomputed once (hoisted out of the kernel) ----
    eps_sq = jnp.float32(1e-24)   # rsqrt(max(s, eps^2)) == 1/max(sqrt(s), eps), eps=1e-12
    xf = x.astype(jnp.float32)
    row_scale = lax.rsqrt(
        jnp.maximum(jnp.sum(xf * xf, axis=1, keepdims=True), eps_sq))          # (B, 1) f32
    wf = W.astype(jnp.float32)
    col_scale = (jnp.float32(1.0 / temp)
                 * lax.rsqrt(jnp.maximum(jnp.sum(wf * wf, axis=1), eps_sq))
                 ).reshape(1, C)                                               # (1, C) f32

    vmem_need = (2 * tb * F * x_isz + 2 * tc * F * w_isz + 2 * tb * tc * o_isz
                 + 2 * (tb + tc) * 4)
    vmem_limit = int(min(max(vmem_need * 3 // 2, 32 * 1024 * 1024), 56 * 1024 * 1024))

    kernel = functools.partial(
        _l2softmax_kernel,
        precision=(lax.Precision.HIGHEST
                   if (x.dtype == jnp.float32 or W.dtype == jnp.float32)
                   else lax.Precision.DEFAULT),
    )

    return pl.pallas_call(
        kernel,
        out_shape=jax.ShapeDtypeStruct((B, C), x.dtype),
        grid=(nb, nc),
        in_specs=[
            pl.BlockSpec((tb, F), lambda i, j: (i, 0)),   # x tile (block idx constant over j)
            pl.BlockSpec((tc, F), lambda i, j: (j, 0)),   # W tile (re-streamed per batch tile)
            pl.BlockSpec((tb, 1), lambda i, j: (i, 0)),   # per-row scale
            pl.BlockSpec((1, tc), lambda i, j: (0, j)),   # per-class scale (1/temp folded in)
        ],
        out_specs=pl.BlockSpec((tb, tc), lambda i, j: (i, j)),
        compiler_params=pltpu.CompilerParams(
            dimension_semantics=("parallel", "parallel"),
            vmem_limit_bytes=vmem_limit,
        ),
        cost_estimate=pl.CostEstimate(
            flops=2 * B * C * F,
            transcendentals=0,
            bytes_accessed=(B * F * x_isz            # x fetched once per batch tile
                            + nb * C * F * w_isz     # W re-streamed nb times
                            + B * C * o_isz          # output
                            + (B + C) * 4),          # scale vectors
        ),
    )(x, W, row_scale, col_scale)


def _reference(x, W, temp=0.05):
    eps = 1e-12
    xn = x / jnp.maximum(jnp.linalg.norm(x, axis=1, keepdims=True), eps)
    wn = W / jnp.maximum(jnp.linalg.norm(W, axis=1, keepdims=True), eps)
    return (xn @ wn.T) / temp


if __name__ == "__main__":
    num_features = 32
    num_classes = 16
    batch = 16
    temp = 0.05

    key = jax.random.PRNGKey(0)
    kx, kw = jax.random.split(key)

    # Deterministic xavier_uniform_-style init for W (num_classes x num_features).
    bound = (6.0 / (num_classes + num_features)) ** 0.5
    W = jax.random.uniform(kw, (num_classes, num_features),
                           dtype=jnp.float32, minval=-bound, maxval=bound)
    x = jax.random.normal(kx, (batch, num_features), dtype=jnp.float32)

    out = l2softmax(x, W, temp=temp)
    out = jax.block_until_ready(out)

    ref = _reference(x, W, temp=temp)
    assert out.shape == (batch, num_classes)
    assert jnp.allclose(out, ref, atol=1e-4, rtol=1e-4)

    print("KERNEL_OK")
</pallas_src>

<mosaic_0001>
module attributes {stable_mosaic.version = 11 : i64} {
  func.func @_l2softmax_kernel(%arg0: i32, %arg1: i32, %arg2: memref<16x32xf32, #tpu.memory_space<vmem>>, %arg3: memref<16x32xf32, #tpu.memory_space<vmem>>, %arg4: memref<16x1xf32, #tpu.memory_space<vmem>>, %arg5: memref<1x16xf32, #tpu.memory_space<vmem>>, %arg6: memref<16x16xf32, #tpu.memory_space<vmem>>) attributes {dimension_semantics = [#tpu.dimension_semantics<parallel>, #tpu.dimension_semantics<parallel>], iteration_bounds = array<i64: 1, 1>, scalar_prefetch = 0 : i64, scratch_operands = 0 : i64, tpu.core_type = #tpu.core_type<tc>, window_params = [{transform_indices = @transform_0, window_bounds = array<i64: 16, 32>}, {transform_indices = @transform_1, window_bounds = array<i64: 16, 32>}, {transform_indices = @transform_2, window_bounds = array<i64: 16, 1>}, {transform_indices = @transform_3, window_bounds = array<i64: 1, 16>}, {transform_indices = @transform_4, window_bounds = array<i64: 16, 16>}]} {
    %c0 = arith.constant 0 : index
    %c0_0 = arith.constant 0 : index
    %0 = vector.load %arg2[%c0, %c0_0] : memref<16x32xf32, #tpu.memory_space<vmem>>, vector<16x32xf32>
    %c0_1 = arith.constant 0 : index
    %c0_2 = arith.constant 0 : index
    %1 = vector.load %arg3[%c0_1, %c0_2] : memref<16x32xf32, #tpu.memory_space<vmem>>, vector<16x32xf32>
    %cst = arith.constant dense<0.000000e+00> : vector<16x16xf32>
    %2 = tpu.matmul %0, %1, %cst {dimension_numbers = #tpu.dot_dimension_numbers<[1], [1], [0], [0], [0, 0, 1, 0], [], []>, precision = #tpu.contract_precision<fp32>} : vector<16x32xf32>, vector<16x32xf32>, vector<16x16xf32> -> vector<16x16xf32>
    %c0_3 = arith.constant 0 : index
    %c0_4 = arith.constant 0 : index
    %3 = vector.load %arg4[%c0_3, %c0_4] : memref<16x1xf32, #tpu.memory_space<vmem>>, vector<16x1xf32>
    %4 = vector.broadcast %3 : vector<16x1xf32> to vector<16x16xf32>
    %5 = arith.mulf %2, %4 : vector<16x16xf32>
    %c0_5 = arith.constant 0 : index
    %c0_6 = arith.constant 0 : index
    %6 = vector.load %arg5[%c0_5, %c0_6] : memref<1x16xf32, #tpu.memory_space<vmem>>, vector<1x16xf32>
    %7 = vector.broadcast %6 : vector<1x16xf32> to vector<16x16xf32>
    %8 = arith.mulf %5, %7 : vector<16x16xf32>
    %c0_7 = arith.constant 0 : index
    %c0_8 = arith.constant 0 : index
    %9 = vector.load %arg6[%c0_7, %c0_8] : memref<16x16xf32, #tpu.memory_space<vmem>>, vector<16x16xf32>
    tpu.vector_store %arg6[%c0_7, %c0_8], %8 {strides = array<i32>} : memref<16x16xf32, #tpu.memory_space<vmem>>, vector<16x16xf32>,
    return
  }
  func.func @transform_0(%arg0: i32, %arg1: i32) -> (i32, i32) {
    %c0_i32 = arith.constant 0 : i32
    %c0_i32_0 = arith.constant 0 : i32
    return %arg0, %c0_i32 : i32, i32
  }
  func.func @transform_1(%arg0: i32, %arg1: i32) -> (i32, i32) {
    %c0_i32 = arith.constant 0 : i32
    %c0_i32_0 = arith.constant 0 : i32
    return %arg1, %c0_i32 : i32, i32
  }
  func.func @transform_2(%arg0: i32, %arg1: i32) -> (i32, i32) {
    %c0_i32 = arith.constant 0 : i32
    %c0_i32_0 = arith.constant 0 : i32
    return %arg0, %c0_i32 : i32, i32
  }
  func.func @transform_3(%arg0: i32, %arg1: i32) -> (i32, i32) {
    %c0_i32 = arith.constant 0 : i32
    %c0_i32_0 = arith.constant 0 : i32
    return %c0_i32, %arg1 : i32, i32
  }
  func.func @transform_4(%arg0: i32, %arg1: i32) -> (i32, i32) {
    %c0_i32 = arith.constant 0 : i32
    return %arg0, %arg1 : i32, i32
  }
}

</mosaic_0001>

<bundles_post_ra>
// kernel: tpu_custom_call.1
= control target key start
LH: loop header
LB: loop body
LE: loop exit
PB: predicated region body
PF: predicated region fallthrough
CT: control target
= control target key end

     0   :  { %9 = vsyncpa [#allocation3], 0  ;;  %s824_s0 = inlined_call_operand.vmem [shape: f32[16,32], index: 0, kind: input, shape index: {}]   ;;  %s825_s1 = inlined_call_operand.hbm [shape: f32[16,32], index: 1, kind: input, shape index: {}]   ;;  %s826_s2 = inlined_call_operand.vmem [shape: f32[16,1], index: 2, kind: input, shape index: {}]   ;;  %s827_s3 = inlined_call_operand.vmem [shape: f32[1,16], index: 3, kind: input, shape index: {}]   ;;  %s828_s4 = inlined_call_operand.hbm [shape: f32[16,16], index: 4, kind: output, shape index: {}]  }
   0x1   :  { %10 = vsyncpa [#allocation4], 0  ;;  %s749_s15 = smov [#allocation2]   ;;  %s701_s19 = scalar_lea.hbm %s825_s1, 256 }
   0x2   :  { %s18_s16 = sshll.u32 %s749_s15, 4  ;;  %p702_p0 = scmp.ne.s32.totalorder %s825_s1, %s701_s19  ;;  %s19_s16 = int_to_ptr.vmem [resolvable:$true] %s18_s16 }
   0x3   :  { %p705_p1 = scmp.lt.u32.totalorder %s701_s19, %s825_s1 }
   0x5   :  { %p707_p2 = pnand %p705_p1, %p702_p0 }
   0x7   :  { %710 = shalt.err (!%p707_p2)
}
   0x8   :  { %s711_s24 = scalar_lea.vmem %s19_s16, 256  ;;  %p716_p4 = scmp.lt.s32.totalorder %s19_s16, %s19_s16 }
   0x9   :  { %p712_p3 = scmp.ne.s32.totalorder %s19_s16, %s711_s24  ;;  %p717_p5 = scmp.lt.s32.totalorder %s711_s24, %s711_s24 }
   0xb   :  { %p718_p6 = por %p717_p5, %p716_p4 }
   0xd   :  { %p719_p7 = pnand %p718_p6, %p712_p3 }
   0xf   :  { %722 = shalt.err (!%p719_p7)
}
  0x10   :  { %s750_s25 = smov 128   ;;  %s751_s26 = smov 8  }
  0x11   :  { %24 = dma.hbm_to_vmem [thread:$0]  %s825_s1, 256, %s19_s16, [#allocation3], %s750_s25, %s750_s25, %s751_s26  }
  0x12   :  { %745 = dma.done.wait [#allocation3], 256  }
  0x13   :  { %746 = vsyncadd [#allocation3], 4294967040  ;;  %v752_v0 = vmov 0   ;;  %vm36_vm0 = vcmask 261120   ;;  %v34_v1 = vld [vmem:[#allocation2] sm:$0xff]  ;;  %v35_v2 = vld [vmem:[#allocation2 + $0x8] sm:$0xff] }
  0x14   :  { %700 = vset.pattern.permute.xlu0 %v752_v0  ;;  %v32_v3 = vld [vmem:[%s824_s0] sm:$0xff]  ;;  %v44_v4 = vsel %vm36_vm0, %v34_v1, 0  ;;  %v47_v5 = vsel %vm36_vm0, %v35_v2, 0  ;;  %v33_v7 = vld [vmem:[%s824_s0 + $0x8] sm:$0xff]  ;;  %s753_s10 = smov [#allocation5]   ;;  %vm574_vm1 = vcmask 130048  }
  0x15   :  { %v38_v6 = vsel %vm36_vm0, %v32_v3, 0  ;;  %v551_v8 = vld [vmem:[%s826_s2] sm:$0xff]  ;;  %v50_v9 = vand.u32 4294901760, %v44_v4  ;;  %v53_v10 = vand.u32 4294901760, %v47_v5  ;;  %v41_v12 = vsel %vm36_vm0, %v33_v7, 0  ;;  %v552_v22 = vld [vmem:[%s826_s2 + $0x8] sm:$0xff] }
  0x16   :  { %v116_v11 = vand.u32 4294901760, %v38_v6  ;;  %555 = vperm.xlu0 %700, %v551_v8   ;;  %v126_v13 = vand.u32 4294901760, %v41_v12  ;;  %v594_v42 = vld [vmem:[%s827_s3] ss:$0 sm:$0xff]  ;;  %s582_s11 = sshll.u32 %s753_s10, 4  ;;  %s583_s11 = int_to_ptr.vmem [resolvable:$true] %s582_s11 }
  0x17   :  { %v661_v14 = vpack.c.bf16 %v53_v10, %v50_v9  ;;  %v138_v16 = vsub.f32 %v44_v4, %v50_v9  ;;  %v145_v17 = vsub.f32 %v47_v5, %v53_v10  ;;  %s723_s12 = scalar_lea.vmem %s583_s11, 256  ;;  %p728_p9 = scmp.lt.s32.totalorder %s583_s11, %s583_s11 }
  0x18   :  { %v117_v15 = vsub.f32 %v38_v6, %v116_v11  ;;  %v127_v18 = vsub.f32 %v41_v12, %v126_v13  ;;  %p724_p8 = scmp.ne.s32.totalorder %s583_s11, %s723_s12  ;;  %p729_p10 = scmp.lt.s32.totalorder %s723_s12, %s723_s12 }
  0x19   :  { %662 = vmatprep.subr.bf16.mxu1 %v661_v14  ;;  %674 = vmatprep.subr.bf16.mxu0 %v661_v14  ;;  %v139_v20 = vand.u32 4294901760, %v138_v16  ;;  %v146_v21 = vand.u32 4294901760, %v145_v17  ;;  %v669_v34 = vpack.c.bf16 %v145_v17, %v138_v16 }
  0x1a   :  { %v118_v19 = vand.u32 4294901760, %v117_v15  ;;  %664 = vmatpush3.bf16.xpose.msra.mxu1 %v661_v14  ;;  %676 = vmatpush3.bf16.xpose.msra.mxu0 %v661_v14  ;;  %v128_v23 = vand.u32 4294901760, %v127_v18  ;;  %p730_p11 = por %p729_p10, %p728_p9 }
  0x1b   :  { %v140_v25 = vsub.f32 %v138_v16, %v139_v20  ;;  %v147_v26 = vsub.f32 %v145_v17, %v146_v21  ;;  %v677_v27 = vpack.c.bf16 %v146_v21, %v139_v20  ;;  %560 = vperm.xlu0 %700, %v552_v22  }
  0x1c   :  { %v119_v24 = vsub.f32 %v117_v15, %v118_v19  ;;  %644 = vmatprep.mubr.f32.mxu0 %v118_v19  ;;  %v129_v28 = vsub.f32 %v127_v18, %v128_v23  ;;  %p731_p12 = pnand %p730_p11, %p724_p8 }
  0x1d   :  { %v141_v30 = vand.u32 4294901760, %v140_v25  ;;  %v148_v31 = vand.u32 4294901760, %v147_v26  ;;  %678 = vmatprep.subr.bf16.mxu0 %v677_v27 }
  0x1e   :  { %v120_v29 = vand.u32 4294901760, %v119_v24  ;;  %v130_v32 = vand.u32 4294901760, %v129_v28 }
  0x1f   :  { %v665_v33 = vpack.c.bf16 %v148_v31, %v141_v30 }
  0x20   :  { %623 = vmatprep.mubr.f32.mxu1 %v120_v29 }
  0x21   :  { %624 = vmatmul.mubr.f32.vlgmr.msra.gmra.mrb[0].mxu1 %v130_v32  ;;  %666 = vmatprep.subr.bf16.mxu1 %v665_v33 }
  0x22   :  { %645 = vmatmul.mubr.f32.vlgmr.msra.gmra.mrb[0].mxu0 %v128_v23  ;;  %668 = vmatpush3.bf16.xpose.msra.mxu1 %v665_v33 }
  0x23   :  { %680 = vmatpush3.bf16.xpose.msra.mxu0 %v677_v27  ;;  %630 = vmatprep.mubr.f32.mxu1 %v116_v11 }
  0x24   :  { %651 = vmatprep.mubr.f32.mxu0 %v116_v11  ;;  %670 = vmatprep.subr.bf16.mxu1 %v669_v34 }
  0x25   :  { %682 = vmatprep.subr.bf16.mxu0 %v661_v14 }
  0x29   :  { %631 = vmatmul.mubr.f32.vlgmr.msra.gmra.mrb[0].mxu1 %v126_v13 }
  0x2a   :  { %652 = vmatmul.mubr.f32.vlgmr.msra.gmra.mrb[0].mxu0 %v126_v13  ;;  %672 = vmatpush3.bf16.xpose.msra.mxu1 %v669_v34 }
  0x2b   :  { %684 = vmatpush3.bf16.xpose.msra.mxu0 %v661_v14  ;;  %637 = vmatprep.mubr.f32.mxu1 %v117_v15 }
  0x2c   :  { %658 = vmatprep.mubr.f32.mxu0 %v116_v11 }
  0x31   :  { %638 = vmatmul.mubr.f32.vlgmr.msra.gmra.mrb[0].mxu1 %v127_v18 }
  0x32   :  { %659 = vmatmul.mubr.f32.vlgmr.msra.gmra.mrb[0].mxu0 %v126_v13 }
  0x95   :  { %v556_v35 = vpop.permute.xlu0 %555 }
  0x9a   :  { %v561_v41 = vpop.permute.xlu0 %560 }
 0x104   :  { %v639_v36 = vpop.f32.mrb[0].mxu1 }
 0x105   :  { %v660_v37 = vpop.f32.mrb[0].mxu0  ;;  %v295_v38 = vpop.f32.mrb[1].mxu1 }
 0x106   :  { %v685_v39 = vadd.f32 %v660_v37, %v639_v36  ;;  %v541_v40 = vpop.f32.mrb[1].mxu0 }
 0x107   :  { %v686_v43 = vadd.f32 %v541_v40, %v295_v38 }
 0x108   :  { %v564_v44 = vmul.f32 %v685_v39, %v561_v41 }
 0x109   :  { %v563_v45 = vmul.f32 %v686_v43, %v556_v35 }
 0x10a   :  { %v573_v46 = vmul.f32 %v594_v42, %v564_v44 }
 0x10b   :  { %v572_v47 = vmul.f32 %v594_v42, %v563_v45 }
 0x10c   :  { %576 = vst.msk [vmem:[#allocation5 + $0x8] sm:$0xff] %vm574_vm1, %v573_v46 }
 0x10d   :  { %575 = vst.msk [vmem:[#allocation5] sm:$0xff] %vm574_vm1, %v572_v47 }
 0x10e   :  { %734 = shalt.err (!%p731_p12)
}
 0x10f   :  { %s735_s14 = scalar_lea.hbm %s828_s4, 256 }
 0x110   :  { %p736_p13 = scmp.ne.s32.totalorder %s828_s4, %s735_s14  ;;  %p739_p0 = scmp.lt.u32.totalorder %s735_s14, %s828_s4 }
 0x112   :  { %p741_p1 = pnand %p739_p0, %p736_p13 }
 0x114   :  { %744 = shalt.err (!%p741_p1)
}
 0x115   :  { %588 = dma.vmem_to_hbm [thread:$0]  %s583_s11, 256, %s828_s4, [#allocation4], %s750_s25, %s750_s25, %s751_s26  }
 0x116   :  { %747 = dma.done.wait [#allocation4], 256  }
 0x117   :  { %748 = vsyncadd [#allocation4], 4294967040 }
 0x118   :  { %592 = vsyncpa [#allocation3], 1 }
 0x119   :  { %593 = vsyncpa [#allocation4], 1 }

</bundles_post_ra>
